<compile_context>
chip_gen: v5e
topology: v5e:2x2
jax: 0.10.0
libtpu: 0.0.40
codegen_flags: <defaults>
</compile_context>

<pallas_src>
import functools

import jax
import jax.numpy as jnp
from jax import lax
from jax.experimental import pallas as pl
from jax.experimental.pallas import tpu as pltpu

EPS = 1e-6
_NEG_BIAS = -1e9       # softplus(-1e9) == 0 exactly -> padded q/k rows are inert


def _kac_kernel(x_ref, w_ref, b_ref, g_ref, o_ref, *, mp, c, bt, hwp, hw):
    """One grid step: `bt` batch elements, both attention branches.

    x_ref : (C, bt*HWp) f32      input slab (bt elements side by side on lanes)
    w_ref : (R, C)      bf16     stacked [Wq; pad; Wk; pad; Wv],  R = 2*mp + C
    b_ref : (R, 1)      f32      stacked biases (pad rows = -1e9)
    g_ref : (2,)        f32 SMEM [gamma_KAM, gamma_CAM]
    o_ref : (C, bt*HWp)          output slab
    """
    gk = g_ref[0]
    gc = g_ref[1]

    x_all = x_ref[...]                                   # (C, bt*HWp) f32
    xb_all = x_all.astype(jnp.bfloat16)

    # ---- fused + batched 1x1-conv projections: ONE MXU matmul per grid step ----
    qkv = jnp.dot(w_ref[...], xb_all,
                  preferred_element_type=jnp.float32) + b_ref[...]        # (R, bt*HWp)

    # Softplus over the whole q/k row block in one shot (one exp + one log1p per
    # element); padded rows (bias -1e9) come out exactly 0.
    qk = qkv[0:2 * mp]
    qk = jnp.maximum(qk, 0.0) + jnp.log1p(jnp.exp(-jnp.abs(qk)))
    if hw != hwp:
        lane = lax.broadcasted_iota(jnp.int32, (1, bt * hwp), 1)
        qk = jnp.where((lane % hwp) < hw, qk, 0.0)        # pad lanes must not feed ksum/vk
        elane = lax.broadcasted_iota(jnp.int32, (1, hwp), 1)
        elem_valid = elane < hw
    v_all = qkv[2 * mp:]                                  # (C, bt*HWp)

    for i in range(bt):                                   # bt <= 8: short static loop
        lo = i * hwp
        hi = lo + hwp
        q = qk[0:mp, lo:hi]                               # (Mp, HWp) f32
        k = qk[mp:2 * mp, lo:hi]                          # (Mp, HWp) f32
        v = v_all[:, lo:hi]                               # (C, HWp)  f32
        x = x_all[:, lo:hi]                               # (C, HWp)  f32
        xb = xb_all[:, lo:hi]

        kb = k.astype(jnp.bfloat16)
        vb = v.astype(jnp.bfloat16)

        # ---------------- KernelAttentionModule ----------------
        # vk[c, m] = sum_n V[c, n] K[m, n]  (== KV^T: next matmul is canonical (M,K)x(K,N))
        vk = lax.dot_general(vb, kb, (((1,), (1,)), ((), ())),
                             preferred_element_type=jnp.float32)          # (C, Mp)
        ksum = jnp.sum(k, axis=-1, keepdims=True) + EPS                   # (Mp, 1)
        # denom[n] = sum_m Q[m, n] * ksum[m]  -> VPU multiply + sublane reduce (no MXU)
        denom = jnp.sum(q * ksum, axis=0, keepdims=True)                  # (1, HWp)
        if hw != hwp:
            denom = jnp.where(elem_valid, denom, 1.0)                     # keep pad lanes finite
        norm = pl.reciprocal(denom, approx=False)
        # f32 operands: the K dim is only Mp, and vk holds sums over HW (bf16 would hurt)
        wv_out = jnp.dot(vk, q, preferred_element_type=jnp.float32)       # (C, HWp)
        kam = x + gk * (wv_out * norm)

        # ---------------- ChannelAttentionModule ----------------
        energy = lax.dot_general(xb, xb, (((1,), (1,)), ((), ())),
                                 preferred_element_type=jnp.float32)      # (C, C)
        # softmax(rowmax(E) - E) == softmax(-E); stabilise with rowmin(E).
        p = jnp.exp(jnp.min(energy, axis=-1, keepdims=True) - energy)
        attn = p * pl.reciprocal(jnp.sum(p, axis=-1, keepdims=True), approx=False)
        cam = gc * jnp.dot(attn.astype(jnp.bfloat16), xb,
                           preferred_element_type=jnp.float32) + x        # (C, HWp)

        o_ref[:, lo:hi] = (kam + cam).astype(o_ref.dtype)


def _round_up(n, m):
    return -(-n // m) * m


def _fuse_params(params):
    """Stack [Wq; Wk; Wv] with q/k row blocks padded to a multiple of 8 sublanes."""
    wq, bq = params["wq"], params["bq"]
    wk, bk = params["wk"], params["bk"]
    wv, bv = params["wv"], params["bv"]
    m, c = wq.shape
    mp = _round_up(max(m, 1), 8)

    def pad(wgt, bia):
        rows = mp - wgt.shape[0]
        wgt = jnp.concatenate([wgt, jnp.zeros((rows, c), jnp.float32)], axis=0)
        bia = jnp.concatenate([bia, jnp.full((rows, 1), _NEG_BIAS, jnp.float32)], axis=0)
        return wgt, bia

    wq, bq = pad(wq, bq)
    wk, bk = pad(wk, bk)
    w_all = jnp.concatenate([wq, wk, wv], axis=0).astype(jnp.bfloat16)    # (2mp+c, c)
    b_all = jnp.concatenate([bq, bk, bv], axis=0).astype(jnp.float32)     # (2mp+c, 1)
    gammas = jnp.stack([params["gamma_kam"].reshape(()),
                        params["gamma_cam"].reshape(())]).astype(jnp.float32)
    return w_all, b_all, gammas, mp


def _vmem_capacity_bytes():
    try:
        return int(pltpu.get_tpu_info().vmem_capacity_bytes)
    except Exception:
        return 64 << 20            # conservative (v7x-sized) default


def _vmem_estimate(c, r, mp, bt, hwp):
    """Rough per-step VMEM footprint: double-buffered I/O blocks + resident weights +
    batched slabs (qkv, softplus(qk), bf16 x) + one element's live f32 temporaries."""
    io = 2 * (2 * 4 * c * bt * hwp)                    # dbl-buffered f32 in+out blocks
    wb = 2 * (2 * r * c + 4 * r) + 32                  # weights + biases + gammas
    slab = (4 * r + 2 * c + 4 * 2 * mp) * bt * hwp     # qkv f32, xb bf16, qk f32
    per_elem = 4 * (6 * c + 2 * mp) * hwp + 4 * 3 * c * c
    return io + wb + slab + per_elem


def _pick_batch_tile(b, c, hwp, vmem_cap, itemsize=4):
    """Batch elements per grid step, generation-aware.

    64 MiB (v7x-like, 2 TCs): small I/O budget and keep >= 2 grid steps when B >= 2 so
    both TensorCores get work.  128 MiB (v5e/v6e, 1 TC): bigger blocks, no such rule.
    Always cap bt at 8 so the short static per-element loop stays cheap to unroll.
    """
    two_tc = vmem_cap <= (65 << 20)
    budget = (4 << 20) if two_tc else (14 << 20)
    per_elem = 2 * itemsize * c * hwp                  # in + out block per batch element
    bt = max(1, min(b, budget // max(per_elem, 1), 8))
    if two_tc and b >= 2:
        bt = max(1, min(bt, b // 2))
    while b % bt:                                      # bt must divide b
        bt -= 1
    return bt


def kac_attention(x_nchw, params):
    """x_nchw: (B, C, H, W) float32.  Returns (B, C, H, W)."""
    b, c, h, w = x_nchw.shape
    hw = h * w
    assert c >= 8, "in_planes must be >= scale(=8) for the 1x1 convs"
    hwp = _round_up(hw, 128)                           # lane-dense, unmasked stores
    assert hwp % 128 == 0

    w_all, b_all, gammas, mp = _fuse_params(params)
    r = w_all.shape[0]

    vmem_cap = _vmem_capacity_bytes()
    ceiling = int(vmem_cap * 0.8)                      # leave ~20% physical headroom
    bt = _pick_batch_tile(b, c, hwp, vmem_cap)
    while bt > 1 and _vmem_estimate(c, r, mp, bt, hwp) > ceiling:
        bt -= 1
        while b % bt:
            bt -= 1
    est = _vmem_estimate(c, r, mp, bt, hwp)
    vmem_limit = int(min(ceiling, max(32 << 20, int(est * 1.25))))
    # TODO(synk): if est > ceiling even at bt == 1 (very large C*HW on 64 MiB v7x),
    # switch to the two-phase HW-tiled structure instead of relying on the clamp.

    nsteps = b // bt

    # (B, C, H, W) -> (nsteps, C, bt*HWp): channels on sublanes, bt*HWp lane-dense.
    x = x_nchw.reshape(b, c, hw)
    if hwp != hw:
        x = jnp.pad(x, ((0, 0), (0, 0), (0, hwp - hw)))
    x = x.reshape(nsteps, bt, c, hwp).transpose(0, 2, 1, 3).reshape(nsteps, c, bt * hwp)

    kernel = functools.partial(_kac_kernel, mp=mp, c=c, bt=bt, hwp=hwp, hw=hw)

    out = pl.pallas_call(
        kernel,
        out_shape=jax.ShapeDtypeStruct((nsteps, c, bt * hwp), x_nchw.dtype),
        grid_spec=pltpu.PrefetchScalarGridSpec(
            num_scalar_prefetch=0,
            grid=(nsteps,),
            in_specs=[
                pl.BlockSpec((None, c, bt * hwp), lambda i: (i, 0, 0)),   # x slab
                pl.BlockSpec((r, c), lambda i: (0, 0)),                   # fused [Wq;Wk;Wv] bf16
                pl.BlockSpec((r, 1), lambda i: (0, 0)),                   # fused biases f32
                pl.BlockSpec(memory_space=pltpu.MemorySpace.SMEM),        # gammas (scalars)
            ],
            out_specs=pl.BlockSpec((None, c, bt * hwp), lambda i: (i, 0, 0)),
        ),
        compiler_params=pltpu.CompilerParams(
            dimension_semantics=("parallel",),
            vmem_limit_bytes=vmem_limit),
    )(x, w_all, b_all, gammas)

    out = out.reshape(nsteps, c, bt, hwp).transpose(0, 2, 1, 3).reshape(b, c, hwp)
    return out[:, :, :hw].reshape(b, c, h, w)


def kac_attention_ref(x_nchw, params, matmul_dtype=jnp.float32):
    """Pure-JAX reference mirroring the PyTorch forward.

    matmul_dtype=jnp.bfloat16 mirrors the kernel's mixed precision (bf16 operands on
    the large matmuls, f32 accumulation; the small wv_out matmul stays f32);
    jnp.float32 is the exact f32 PyTorch math.
    """
    b, c, h, w = x_nchw.shape
    hw = h * w
    x = x_nchw.reshape(b, c, hw).astype(jnp.float32)
    md = matmul_dtype

    def mm(eq, a, b_):
        return jnp.einsum(eq, a.astype(md), b_.astype(md),
                          preferred_element_type=jnp.float32)

    # KernelAttentionModule
    q = mm("mc,bcn->bmn", params["wq"], x) + params["bq"][None]
    k = mm("mc,bcn->bmn", params["wk"], x) + params["bk"][None]
    v = mm("dc,bcn->bdn", params["wv"], x) + params["bv"][None]
    q = jax.nn.softplus(q)
    k = jax.nn.softplus(k)
    kv = mm("bmn,bcn->bmc", k, v)                             # (b, m, c)
    ksum = jnp.sum(k, axis=-1) + EPS                          # (b, m)
    norm = 1.0 / jnp.einsum("bmn,bm->bn", q, ksum)            # (b, hw)
    wv_out = jnp.einsum("bmc,bmn->bcn", kv, q)                # f32 (kernel keeps this f32 too)
    kam = x + params["gamma_kam"].reshape(()) * (wv_out * norm[:, None, :])

    # ChannelAttentionModule
    energy = mm("bcn,bdn->bcd", x, x)
    energy_new = jnp.max(energy, axis=-1, keepdims=True) - energy
    attn = jax.nn.softmax(energy_new, axis=-1)
    cam = params["gamma_cam"].reshape(()) * mm("bcd,bdn->bcn", attn, x) + x

    return (kam + cam).reshape(b, c, h, w)


def make_params(key, c, scale=8):
    m = c // scale
    ks = jax.random.split(key, 6)
    # Shapes match the Conv2d(1x1) weights of the module.
    # NOTE: the PyTorch module inits gamma to 0; nonzero gammas are used here so the
    # attention compute actually affects the output.
    return {
        "wq": 0.1 * jax.random.normal(ks[0], (m, c), jnp.float32),
        "bq": 0.1 * jax.random.normal(ks[1], (m, 1), jnp.float32),
        "wk": 0.1 * jax.random.normal(ks[2], (m, c), jnp.float32),
        "bk": 0.1 * jax.random.normal(ks[3], (m, 1), jnp.float32),
        "wv": 0.1 * jax.random.normal(ks[4], (c, c), jnp.float32),
        "bv": 0.1 * jax.random.normal(ks[5], (c, 1), jnp.float32),
        "gamma_kam": jnp.full((1,), 0.5, jnp.float32),
        "gamma_cam": jnp.full((1,), 0.5, jnp.float32),
    }


if __name__ == "__main__":
    key = jax.random.PRNGKey(0)
    kx, kp = jax.random.split(key)

    B, C, H, W = 2, 16, 16, 16           # in_planes must be >= scale(=8)
    x = jax.random.normal(kx, (B, C, H, W), jnp.float32)
    params = make_params(kp, C)

    out = jax.block_until_ready(kac_attention(x, params))
    assert out.shape == (B, C, H, W)
    assert bool(jnp.all(jnp.isfinite(out)))

    # Primary check: same math at the kernel's precision (bf16 operands on the big
    # matmuls, f32 accumulation, f32 wv_out).
    ref_mixed = kac_attention_ref(x, params, matmul_dtype=jnp.bfloat16)
    assert jnp.allclose(out, ref_mixed, atol=2e-2, rtol=2e-2), (
        float(jnp.max(jnp.abs(out - ref_mixed))))

    # Loose drift guard against the exact f32 PyTorch-equivalent math.
    ref_f32 = kac_attention_ref(x, params, matmul_dtype=jnp.float32)
    assert float(jnp.max(jnp.abs(out - ref_f32))) < 0.5

    print("KERNEL_OK")
</pallas_src>

<mosaic_0001>
module attributes {stable_mosaic.version = 11 : i64} {
  func.func @_kac_kernel(%arg0: i32, %arg1: memref<1x16x256xf32, #tpu.memory_space<vmem>>, %arg2: memref<32x16xbf16, #tpu.memory_space<vmem>>, %arg3: memref<32x1xf32, #tpu.memory_space<vmem>>, %arg4: memref<2xf32, #tpu.memory_space<smem>>, %arg5: memref<1x16x256xf32, #tpu.memory_space<vmem>>) attributes {dimension_semantics = [#tpu.dimension_semantics<parallel>], iteration_bounds = array<i64: 2>, scalar_prefetch = 0 : i64, scratch_operands = 0 : i64, tpu.core_type = #tpu.core_type<tc>, window_params = [{transform_indices = @transform_0, window_bounds = array<i64: 1, 16, 256>}, {pipeline_mode = #tpu.pipeline_mode<synchronous>, transform_indices = @transform_1, window_bounds = array<i64: 32, 16>}, {pipeline_mode = #tpu.pipeline_mode<synchronous>, transform_indices = @transform_2, window_bounds = array<i64: 32, 1>}, {transform_indices = @transform_3, window_bounds = array<i64: 2>}, {transform_indices = @transform_4, window_bounds = array<i64: 1, 16, 256>}]} {
    %c0 = arith.constant 0 : index
    %0 = memref.load %arg4[%c0] : memref<2xf32, #tpu.memory_space<smem>>
    %c1 = arith.constant 1 : index
    %1 = memref.load %arg4[%c1] : memref<2xf32, #tpu.memory_space<smem>>
    %c0_0 = arith.constant 0 : index
    %c0_1 = arith.constant 0 : index
    %c0_2 = arith.constant 0 : index
    %2 = vector.load %arg1[%c0_0, %c0_1, %c0_2] : memref<1x16x256xf32, #tpu.memory_space<vmem>>, vector<1x16x256xf32>
    %3 = vector.shape_cast %2 : vector<1x16x256xf32> to vector<16x256xf32>
    %4 = arith.truncf %3 : vector<16x256xf32> to vector<16x256xbf16>
    %c0_3 = arith.constant 0 : index
    %c0_4 = arith.constant 0 : index
    %5 = vector.load %arg2[%c0_3, %c0_4] : memref<32x16xbf16, #tpu.memory_space<vmem>>, vector<32x16xbf16>
    %cst = arith.constant dense<0.000000e+00> : vector<32x256xf32>
    %6 = tpu.matmul %5, %4, %cst {dimension_numbers = #tpu.dot_dimension_numbers<[1], [0], [0], [1], [0, 0, 1, 1], [], []>} : vector<32x16xbf16>, vector<16x256xbf16>, vector<32x256xf32> -> vector<32x256xf32>
    %c0_5 = arith.constant 0 : index
    %c0_6 = arith.constant 0 : index
    %7 = vector.load %arg3[%c0_5, %c0_6] : memref<32x1xf32, #tpu.memory_space<vmem>>, vector<32x1xf32>
    %8 = vector.broadcast %7 : vector<32x1xf32> to vector<32x256xf32>
    %9 = arith.addf %6, %8 : vector<32x256xf32>
    %10 = vector.extract_strided_slice %9 {offsets = [0, 0], sizes = [16, 256], strides = [1, 1]} : vector<32x256xf32> to vector<16x256xf32>
    %cst_7 = arith.constant 0.000000e+00 : f32
    %11 = vector.broadcast %cst_7 : f32 to vector<16x256xf32>
    %12 = arith.maximumf %10, %11 : vector<16x256xf32>
    %13 = math.absf %10 : vector<16x256xf32>
    %cst_8 = arith.constant 0.000000e+00 : f32
    %14 = vector.broadcast %cst_8 : f32 to vector<16x256xf32>
    %15 = arith.subf %14, %13 : vector<16x256xf32>
    %16 = math.exp %15 : vector<16x256xf32>
    %17 = math.log1p %16 : vector<16x256xf32>
    %18 = arith.addf %12, %17 : vector<16x256xf32>
    %19 = vector.extract_strided_slice %9 {offsets = [16, 0], sizes = [16, 256], strides = [1, 1]} : vector<32x256xf32> to vector<16x256xf32>
    %20 = vector.extract_strided_slice %18 {offsets = [0, 0], sizes = [8, 256], strides = [1, 1]} : vector<16x256xf32> to vector<8x256xf32>
    %21 = vector.extract_strided_slice %18 {offsets = [8, 0], sizes = [8, 256], strides = [1, 1]} : vector<16x256xf32> to vector<8x256xf32>
    %22 = arith.truncf %21 : vector<8x256xf32> to vector<8x256xbf16>
    %23 = arith.truncf %19 : vector<16x256xf32> to vector<16x256xbf16>
    %cst_9 = arith.constant dense<0.000000e+00> : vector<16x8xf32>
    %24 = tpu.matmul %23, %22, %cst_9 {dimension_numbers = #tpu.dot_dimension_numbers<[1], [1], [0], [0], [0, 0, 1, 0], [], []>} : vector<16x256xbf16>, vector<8x256xbf16>, vector<16x8xf32> -> vector<16x8xf32>
    %cst_10 = arith.constant dense<0.000000e+00> : vector<8xf32>
    %25 = vector.multi_reduction <add>, %21, %cst_10 [1] : vector<8x256xf32> to vector<8xf32>
    %26 = vector.shape_cast %25 : vector<8xf32> to vector<8x1xf32>
    %cst_11 = arith.constant 9.99999997E-7 : f32
    %27 = vector.broadcast %cst_11 : f32 to vector<8x1xf32>
    %28 = arith.addf %26, %27 : vector<8x1xf32>
    %29 = vector.broadcast %28 : vector<8x1xf32> to vector<8x256xf32>
    %30 = arith.mulf %20, %29 : vector<8x256xf32>
    %cst_12 = arith.constant dense<0.000000e+00> : vector<256xf32>
    %31 = vector.multi_reduction <add>, %30, %cst_12 [0] : vector<8x256xf32> to vector<256xf32>
    %32 = vector.shape_cast %31 : vector<256xf32> to vector<1x256xf32>
    %33 = tpu.reciprocal %32 : vector<1x256xf32> -> vector<1x256xf32>
    %cst_13 = arith.constant dense<0.000000e+00> : vector<16x256xf32>
    %34 = tpu.matmul %24, %20, %cst_13 {dimension_numbers = #tpu.dot_dimension_numbers<[1], [0], [0], [1], [0, 0, 1, 1], [], []>} : vector<16x8xf32>, vector<8x256xf32>, vector<16x256xf32> -> vector<16x256xf32>
    %35 = vector.broadcast %33 : vector<1x256xf32> to vector<16x256xf32>
    %36 = arith.mulf %34, %35 : vector<16x256xf32>
    %37 = vector.broadcast %0 : f32 to vector<16x256xf32>
    %38 = arith.mulf %37, %36 : vector<16x256xf32>
    %39 = arith.addf %3, %38 : vector<16x256xf32>
    %cst_14 = arith.constant dense<0.000000e+00> : vector<16x16xf32>
    %40 = tpu.matmul %4, %4, %cst_14 {dimension_numbers = #tpu.dot_dimension_numbers<[1], [1], [0], [0], [0, 0, 1, 0], [], []>} : vector<16x256xbf16>, vector<16x256xbf16>, vector<16x16xf32> -> vector<16x16xf32>
    %cst_15 = arith.constant dense<0x7F800000> : vector<16xf32>
    %41 = vector.multi_reduction <minimumf>, %40, %cst_15 [1] : vector<16x16xf32> to vector<16xf32>
    %42 = vector.shape_cast %41 : vector<16xf32> to vector<16x1xf32>
    %43 = vector.broadcast %42 : vector<16x1xf32> to vector<16x16xf32>
    %44 = arith.subf %43, %40 : vector<16x16xf32>
    %45 = math.exp %44 : vector<16x16xf32>
    %cst_16 = arith.constant dense<0.000000e+00> : vector<16xf32>
    %46 = vector.multi_reduction <add>, %45, %cst_16 [1] : vector<16x16xf32> to vector<16xf32>
    %47 = vector.shape_cast %46 : vector<16xf32> to vector<16x1xf32>
    %48 = tpu.reciprocal %47 : vector<16x1xf32> -> vector<16x1xf32>
    %49 = vector.broadcast %48 : vector<16x1xf32> to vector<16x16xf32>
    %50 = arith.mulf %45, %49 : vector<16x16xf32>
    %51 = arith.truncf %50 : vector<16x16xf32> to vector<16x16xbf16>
    %cst_17 = arith.constant dense<0.000000e+00> : vector<16x256xf32>
    %52 = tpu.matmul %51, %4, %cst_17 {dimension_numbers = #tpu.dot_dimension_numbers<[1], [0], [0], [1], [0, 0, 1, 1], [], []>} : vector<16x16xbf16>, vector<16x256xbf16>, vector<16x256xf32> -> vector<16x256xf32>
    %53 = vector.broadcast %1 : f32 to vector<16x256xf32>
    %54 = arith.mulf %53, %52 : vector<16x256xf32>
    %55 = arith.addf %54, %3 : vector<16x256xf32>
    %56 = arith.addf %39, %55 : vector<16x256xf32>
    %c0_18 = arith.constant 0 : index
    %c0_19 = arith.constant 0 : index
    %c0_20 = arith.constant 0 : index
    %57 = vector.load %arg5[%c0_18, %c0_19, %c0_20] : memref<1x16x256xf32, #tpu.memory_space<vmem>>, vector<1x16x256xf32>
    %58 = vector.shape_cast %57 : vector<1x16x256xf32> to vector<16x256xf32>
    %59 = vector.shape_cast %56 : vector<16x256xf32> to vector<1x16x256xf32>
    tpu.vector_store %arg5[%c0_18, %c0_19, %c0_20], %59 {strides = array<i32>} : memref<1x16x256xf32, #tpu.memory_space<vmem>>, vector<1x16x256xf32>,
    return
  }
  func.func @transform_0(%arg0: i32) -> (i32, i32, i32) {
    %c0_i32 = arith.constant 0 : i32
    %c0_i32_0 = arith.constant 0 : i32
    %c0_i32_1 = arith.constant 0 : i32
    return %arg0, %c0_i32, %c0_i32_0 : i32, i32, i32
  }
  func.func @transform_1(%arg0: i32) -> (i32, i32) {
    %c0_i32 = arith.constant 0 : i32
    %c0_i32_0 = arith.constant 0 : i32
    %c0_i32_1 = arith.constant 0 : i32
    return %c0_i32, %c0_i32_0 : i32, i32
  }
  func.func @transform_2(%arg0: i32) -> (i32, i32) {
    %c0_i32 = arith.constant 0 : i32
    %c0_i32_0 = arith.constant 0 : i32
    %c0_i32_1 = arith.constant 0 : i32
    return %c0_i32, %c0_i32_0 : i32, i32
  }
  func.func @transform_3(%arg0: i32) -> i32 {
    %c0_i32 = arith.constant 0 : i32
    %c0_i32_0 = arith.constant 0 : i32
    return %c0_i32 : i32
  }
  func.func @transform_4(%arg0: i32) -> (i32, i32, i32) {
    %c0_i32 = arith.constant 0 : i32
    %c0_i32_0 = arith.constant 0 : i32
    %c0_i32_1 = arith.constant 0 : i32
    return %arg0, %c0_i32, %c0_i32_0 : i32, i32, i32
  }
}

</mosaic_0001>

<bundles_post_ra>
// kernel: tpu_custom_call.1
= control target key start
LH: loop header
LB: loop body
LE: loop exit
PB: predicated region body
PF: predicated region fallthrough
CT: control target
= control target key end

     0   :  { %s1254_s0 = inlined_call_operand.hbm [shape: f32[2,16,256], index: 0, kind: input, shape index: {}]   ;;  %s1255_s1 = inlined_call_operand.vmem [shape: bf16[32,16], index: 1, kind: input, shape index: {}]   ;;  %s1256_s2 = inlined_call_operand.vmem [shape: f32[32,1], index: 2, kind: input, shape index: {}]   ;;  %s1257_s3 = inlined_call_operand.vmem [shape: f32[2], index: 3, kind: input, shape index: {}]   ;;  %s1258_s4 = inlined_call_operand.hbm [shape: f32[2,16,256], index: 4, kind: output, shape index: {}]  }
   0x1   :  { %1259 = sst [smem:[#allocation11_spill]] %s1257_s3 }
   0x2   :  { %9 = vsyncpa [#allocation3], 0 }
   0x3   :  { %11 = vsyncpa [#allocation3 + $0x1], 0 }
   0x4   :  { %12 = vsyncpa [#allocation5], 0 }
   0x5   :  { %13 = vsyncpa [#allocation4], 0 }
   0x6   :  { %15 = vsyncpa [#allocation4 + $0x1], 0  ;;  %s1034_s15 = smov 0   ;;  %s1036_s16 = smov 0  }
   0x7   :  { %s1038_s17 = smov 0   ;;  %s1040_s18 = smov 0  }
   0x8 LB: > { %s1055_s19 = sadd.s32 4294967295, %s1001_s18   ;;  %s754_s20 = sadd.s32 4294967294, %s1001_s18   ;;  %s1001_s18 = sphi %s1040_s18, %s1271_s18   ;;  %s997_s17 = sphi %s1038_s17, %s1270_s17   ;;  %s993_s16 = sphi %s1036_s16, %s1269_s16   ;;  %s989_s15 = sphi %s1034_s15, %s1268_s15  }
   0x9   : > { %s1059_s21 = sadd.s32 1, %s1001_s18   ;;  %s28_s22 = sadd.s32 1, %s997_s17 }
   0xa   : > { %s25_s23 = ssub.s32 %s1001_s18, %s1059_s21  ;;  %p35_p0 = scmp.ne.s32.totalorder %s997_s17, %s993_s16 }
   0xb   : > { %p26_p1 = scmp.eq.s32.totalorder %s25_s23, 0  ;;  %p36_p2 = scmp.eq.s32.totalorder %s1001_s18, 0 }
   0xc   : > { %p41_p3 = scmp.ne.s32.totalorder %s993_s16, %s989_s15  ;;  %p42_p4 = scmp.eq.s32.totalorder %s1055_s19, 0 }
   0xd   : > { %s1071_s24 = scalar_select %p26_p1, %s997_s17, %s28_s22  }
   0xe   : > { %p1073_p5 = por %p36_p2, %p35_p0  ;;  %p1079_p6 = por %p42_p4, %p41_p3 }
   0xf   : > { %p128_p7 = scmp.eq.s32.totalorder %s1055_s19, 1  ;;  %p134_p8 = scmp.eq.s32.totalorder %s754_s20, 1 }
  0x10   : > { %p755_p9 = scmp.ge.s32.totalorder %s1001_s18, 1  ;;  %p141_p10 = scmp.lt.s32.totalorder %s1001_s18, 3 }
  0x11   : > { %p1086_p11 = por %p128_p7, %p35_p0  ;;  %p1090_p12 = por %p134_p8, %p41_p3 }
  0x12   : > { %p1094_p13 = pnand %p755_p9, %p141_p10  ;;  %s1265_s3 = sld [smem:[#allocation11_spill]] }
  0x13   : > { %p814_p2 = scmp.lt.s32.totalorder %s1001_s18, 2  ;;  %s170_s7 = sand.u32 1, %s997_s17  }
  0x14   : > { %p801_p1 = pneg %p1094_p13  ;;  %s758_s9 = sshll.u32 %s170_s7, 5 }
  0x15   : > { %p1110_p3 = pnand %p814_p2, %p1073_p5  ;;  %s1003_s10 = smov [#allocation6]  }
  0x16   : > { %p802_p7 = pnand %p801_p1, %p42_p4  ;;  %s789_s11 = sshll.u32 %s1001_s18, 5 }
  0x17   : > { %s174_s12 = scalar_lea.vmem [#allocation2], %s758_s9  ;;  %s179_s22 = scalar_lea.hbm %s1254_s0, %s789_s11 }
  0x18   : > { %s159_s6 = sshll.u32 %s1265_s3, 4  ;;  %s182_s13 = sshll.u32 %s174_s12, 4  ;;  %s160_s6 = int_to_ptr.vmem [resolvable:$true] %s159_s6  ;;  %s183_s13 = int_to_ptr.vmem [resolvable:$true] %s182_s13 }
  0x19   : > { %804 = dma.vmem_to_smem (!%p802_p7), %s160_s6, 16, %s1003_s10, [#allocation5]  }
  0x1a   : > { %s180_s23 = sshll.u32 %s179_s22, 4  ;;  %s171_s30 = scalar_lea.sflag [#allocation3], %s170_s7  ;;  %s181_s23 = int_to_ptr.hbm [resolvable:$true] %s180_s23 }
  0x1b   : > { %s901_s25 = sshra.s32 %s181_s23, 4  ;;  %p905_p8 = pneg %p1110_p3  ;;  %s902_s25 = int_to_ptr.hbm [resolvable:$true] %s901_s25 }
  0x1c   : > { %s903_s5 = scalar_lea.hbm %s902_s25, 32  ;;  %s908_s9 = scalar_lea.hbm %s1254_s0, 64 }
  0x1d   : > { %p904_p5 = scmp.ne.s32.totalorder %s902_s25, %s903_s5  ;;  %p909_p1 = scmp.lt.s32.totalorder %s902_s25, %s1254_s0 }
  0x1e   : > { %p910_p2 = scmp.lt.s32.totalorder %s908_s9, %s903_s5 }
  0x1f   : > { %p906_p9 = pnand %p905_p8, %p904_p5 }
  0x20   : > { %p911_p7 = por %p910_p2, %p909_p1 }
  0x21   : > { %p907_p10 = pneg %p906_p9 }
  0x23   : > { %p912_p0 = pnand %p911_p7, %p907_p10 }
  0x25   : > { %915 = shalt.err (!%p912_p0)
}
  0x26   : > { %s1004_s7 = smov 256   ;;  %s1005_s11 = smov 16  }
  0x27   : > { %808 = dma.hbm_to_vmem [thread:$0]  (!%p1110_p3), %s181_s23, 512, %s183_s13, %s171_s30, %s1004_s7, %s1004_s7, %s1005_s11  }
  0x28   : > { %194 = sbr.rel (%p1094_p13) target bundleno = 642 (0x282), region = 36  ;;  %s1131_s14 = sand.u32 (!%p1094_p13), 1, %s993_s16  }
  0x29   : > { %s762_s3 = sshll.u32 (!%p1094_p13), %s1131_s14, 5  ;;  %s197_s20 = scalar_lea.sflag (!%p1094_p13), [#allocation3], %s1131_s14 }
  0x2a   : > { %s200_s22 = scalar_lea.vmem (!%p1094_p13), [#allocation2], %s762_s3 }
  0x2d   : > { %976 = dma.done.wait (%p1079_p6), %s197_s20, 512  }
  0x2e   : > { %978 = vsyncadd (%p1079_p6), %s197_s20, 4294966784 }
  0x2f   : > { %980 = dma.done.wait (%p42_p4), [#allocation5], 16  }
  0x30   : > { %982 = vsyncadd (%p42_p4), [#allocation5], 4294967280 }
  0x31   : > { %211 = sfence }
  0x32   : > { %v1145_v0 = vld [vmem:[%s200_s22] sm:$0xff]  ;;  %v1147_v1 = vld [vmem:[%s200_s22 + $0x10] sm:$0xff]  ;;  %v1149_v2 = vld [vmem:[%s200_s22 + $0x8] sm:$0xff]  ;;  %v1006_v5 = vmov 0   ;;  %vm279_vm0 = vcmask 130048   ;;  %vm462_vm5 = vcmask 64512  }
  0x33   : > { %v1153_v3 = vpack.c.bf16 %v1147_v1, %v1145_v0  ;;  %v1155_v4 = vld [vmem:[%s200_s22 + $0x18] sm:$0xff]  ;;  %855 = vset.pattern.permute.xlu0 %v1006_v5  ;;  %856 = vset.pattern.permute.xlu1 %v1006_v5  ;;  %v790_v7 = vld [vmem:[%s1255_s1] sm:$0xff]  ;;  %v246_v8 = vld [vmem:[%s1256_s2 + $0x8] sm:$0xff]  ;;  %s233_s7 = sld [smem:[#allocation6]]  ;;  %s792_s20 = sshll.u32 %s1055_s19, 5 }
  0x34   : > { %v1159_v6 = vpack.c.bf16 %v1155_v4, %v1149_v2  ;;  %857 = vset.pattern.permute.xlu2 %v1006_v5  ;;  %256 = vperm.xlu0 %855, %v246_v8   ;;  %v248_v9 = vld [vmem:[%s1256_s2 + $0x18] sm:$0xff]  ;;  %v247_v10 = vld [vmem:[%s1256_s2 + $0x10] sm:$0xff]  ;;  %v791_v11 = vld [vmem:[%s1255_s1 + $0x8] sm:$0xff]  ;;  %s765_s11 = sld [smem:[#allocation6 + $0x1]]  ;;  %s231_s22 = scalar_lea.vmem [#allocation7], %s762_s3 }
  0x35   : > { %293 = vmatpush.bf16.msra.mxu0 %v1153_v3  ;;  %266 = vperm.xlu1 %856, %v248_v9   ;;  %s665_s8 = scalar_lea.hbm %s1258_s4, %s792_s20  ;;  %s666_s13 = sshll.u32 %s231_s22, 4  ;;  %s667_s13 = int_to_ptr.vmem [resolvable:$true] %s666_s13 }
  0x36   : > { %312 = vmatpush.bf16.msra.mxu1 %v1159_v6  ;;  %s668_s23 = sshll.u32 %s665_s8, 4  ;;  %s654_s19 = scalar_lea.sflag [#allocation4], %s1131_s14  ;;  %s669_s23 = int_to_ptr.hbm [resolvable:$true] %s668_s23 }
  0x37   : > { %s945_s3 = sshra.s32 %s669_s23, 4  ;;  %s951_s6 = scalar_lea.hbm %s1258_s4, 64  ;;  %s946_s3 = int_to_ptr.hbm [resolvable:$true] %s945_s3 }
  0x38   : > { %774 = vmatmul.msk.bf16.vlgmr.msra.gmra.mxu0 %vm279_vm0, %v790_v7  ;;  %s947_s30 = scalar_lea.hbm %s946_s3, 32  ;;  %p952_p0 = scmp.lt.s32.totalorder %s946_s3, %s1258_s4 }
  0x39   : > { %535 = vmatpush.bf16.xpose.msrb.mxu0 %v1153_v3  ;;  %776 = vmatmul.msk.bf16.vlgmr.msra.gmra.mxu1 %vm279_vm0, %v790_v7  ;;  %p948_p4 = scmp.ne.s32.totalorder %s946_s3, %s947_s30  ;;  %p953_p3 = scmp.lt.s32.totalorder %s951_s6, %s947_s30 }
  0x3a   : > { %549 = vmatpush.bf16.xpose.msrb.mxu1 %v1159_v6 }
  0x3b   : > { %p949_p6 = pnand %p948_p4, %p1086_p11  ;;  %p954_p5 = por %p953_p3, %p952_p0 }
  0x3c   : > { %261 = vperm.xlu0 %855, %v247_v10  }
  0x3d   : > { %p950_p13 = pneg %p949_p6 }
  0x3f   : > { %p955_p8 = pnand %p954_p5, %p950_p13 }
  0x48   : > { %775 = vmatmul.msk.bf16.gmra.mxu0 %vm279_vm0, %v791_v11 }
  0x49   : > { %777 = vmatmul.msk.bf16.gmra.mxu1 %vm279_vm0, %v791_v11 }
  0x58   : > { %536 = vmatmul.bf16.vlgmr.msrb.gmra.mxu0 %v1153_v3 }
  0x59   : > { %550 = vmatmul.bf16.vlgmr.msrb.gmra.mxu1 %v1159_v6 }
  0xa6   : > { %v257_v14 = vpop.permute.xlu0 %256 }
  0xa7   : > { %v267_v55 = vpop.permute.xlu1 %266 }
  0xae   : > { %v262_v58 = vpop.permute.xlu0 %261 }
  0xb5   : > { %v1186_v12 = vpop.f32.mrf.mxu0 }
  0xb6   : > { %v1188_v13 = vpop.f32.mrf.mxu1 }
  0xbd   : > { %v297_v15 = vpop.f32.mrf.mxu0 }
  0xbe   : > { %v298_v16 = vadd.f32 %v297_v15, %v257_v14  ;;  %v316_v17 = vpop.f32.mrf.mxu1 }
  0xbf   : > { %v317_v18 = vadd.f32 %v316_v17, %v257_v14  ;;  %v245_v14 = vld [vmem:[%s1256_s2] sm:$0xff] }
  0xc0   : > { %v330_v19 = vand.u32 2147483647, %v298_v16  ;;  %v326_v42 = vmax.f32 %v298_v16, 0.0 }
  0xc1   : > { %v331_v20 = vand.u32 2147483647, %v317_v18  ;;  %v327_v49 = vmax.f32 %v317_v18, 0.0 }
  0xc2   : > { %v334_v21 = vsub.f32 0.0, %v330_v19 }
  0xc3   : > { %v335_v22 = vsub.f32 0.0, %v331_v20 }
  0xc4   : > { %v340_v23 = vmul.f32 1.442695, %v334_v21 }
  0xc5   : > { %v342_v24 = vmul.f32 1.442695, %v335_v22  ;;  %v300_v25 = vpop.f32.mrf.mxu0 }
  0xc6   : > { %858 = vpow2.f32 %v340_v23  ;;  %v319_v26 = vpop.f32.mrf.mxu1  ;;  %v301_v5 = vadd.f32 %v300_v25, %v262_v58 }
  0xc7   : > { %860 = vpow2.f32 %v342_v24  ;;  %v320_v8 = vadd.f32 %v319_v26, %v262_v58 }
  0xcc   : > { %v859_v27 = vpop.eup %858 }
  0xcd   : > { %v861_v28 = vpop.eup %860  ;;  %v302_v29 = vpop.f32.mrf.mxu0  ;;  %v362_v30 = vadd.f32 1.0, %v859_v27  ;;  %v365_v32 = vmul.f32 -0.5, %v859_v27  ;;  %v368_v36 = vand.u32 2147483647, %v859_v27 }
  0xce   : > { %v321_v31 = vpop.f32.mrf.mxu1  ;;  %v371_v33 = vadd.f32 1.0, %v861_v28  ;;  %v374_v34 = vmul.f32 -0.5, %v861_v28  ;;  %v377_v38 = vand.u32 2147483647, %v861_v28  ;;  %v303_v60 = vadd.f32 %v302_v29, %v267_v55 }
  0xcf   : > { %862 = vlog2.f32 %v362_v30  ;;  %v366_v35 = vadd.f32 1.0, %v365_v32  ;;  %vm369_vm1 = vcmp.lt.f32.partialorder %v368_v36, 0.0004427343  ;;  %v322_v62 = vadd.f32 %v321_v31, %v267_v55 }
  0xd0   : > { %864 = vlog2.f32 %v371_v33  ;;  %v375_v37 = vadd.f32 1.0, %v374_v34  ;;  %vm378_vm2 = vcmp.lt.f32.partialorder %v377_v38, 0.0004427343  ;;  %v386_v10 = vpack.c.bf16 %v303_v60, %v301_v5 }
  0xd1   : > { %v367_v45 = vmul.f32 %v859_v27, %v366_v35  ;;  %v387_v11 = vpack.c.bf16 %v322_v62, %v320_v8 }
  0xd2   : > { %v376_v48 = vmul.f32 %v861_v28, %v375_v37 }
  0xd5   : > { %v863_v39 = vpop.eup %862  ;;  %v537_v40 = vpop.f32.mrf.mxu0 }
  0xd6   : > { %v865_v41 = vpop.eup %864  ;;  %v551_v43 = vpop.f32.mrf.mxu1  ;;  %v364_v44 = vmul.f32 0.6931472, %v863_v39 }
  0xd7   : > { %v552_v46 = vadd.f32 %v551_v43, %v537_v40  ;;  %v373_v47 = vmul.f32 0.6931472, %v865_v41 }
  0xd8   : > { %v370_v50 = vsel %vm369_vm1, %v367_v45, %v364_v44 }
  0xd9   : > { %v556_v51 = vsel %vm279_vm0, %v552_v46, inf  ;;  %v382_v52 = vadd.f32 %v370_v50, %v326_v42  ;;  %v379_v53 = vsel %vm378_vm2, %v376_v48, %v373_v47 }
  0xda   : > { %557 = vmin.xlane.f32.xlu1 %v556_v51  ;;  %v383_v54 = vadd.f32 %v379_v53, %v327_v49 }
  0xdb   : > { %v384_v56 = vpack.c.bf16 %v382_v52, %v382_v52 }
  0xdc   : > { %v385_v57 = vpack.c.bf16 %v383_v54, %v383_v54  ;;  %v416_v7 = vadd.f32 %v383_v54, %v382_v52 }
  0xdd   : > { %395 = vmatpush.bf16.xpose.msra.mxu2 %v384_v56  ;;  %v539_v59 = vpop.f32.mrf.mxu0 }
  0xde   : > { %409 = vmatpush.bf16.xpose.msra.mxu3 %v385_v57  ;;  %v553_v61 = vpop.f32.mrf.mxu1 }
  0xdf   : > { %v554_v63 = vadd.f32 %v553_v61, %v539_v59 }
  0xe1   : > { %v559_v9 = vsel %vm279_vm0, %v554_v63, inf }
  0xe2   : > { %560 = vmin.xlane.f32.xlu2 %v559_v9  ;;  %417 = vadd.xlane.f32.xlu1 %v416_v7 }
  0xe4   : > { %396 = vmatmul.bf16.vlgmr.msra.gmra.mxu2 %v386_v10 }
  0xe5   : > { %410 = vmatmul.bf16.vlgmr.msra.gmra.mxu3 %v387_v11 }
  0xfa   : > { %251 = vperm.xlu2 %857, %v245_v14  }
 0x14d   : > { %v558_v15 = vpop.xlane.xlu1 %557 }
 0x14e   : > { %v562_v16 = vsub.f32 %v558_v15, %v552_v46 }
 0x150   : > { %v564_v17 = vmul.f32 1.442695, %v562_v16 }
 0x152   : > { %866 = vpow2.f32 %v564_v17 }
 0x155   : > { %v561_v18 = vpop.xlane.xlu2 %560 }
 0x156   : > { %v563_v19 = vsub.f32 %v561_v18, %v554_v63 }
 0x158   : > { %v1195_v20 = vpop.eup %866  ;;  %v566_v21 = vmul.f32 1.442695, %v563_v19 }
 0x159   : > { %v568_v22 = vsel %vm279_vm0, %v1195_v20, 0.0 }
 0x15a   : > { %868 = vpow2.f32 %v566_v21  ;;  %569 = vadd.xlane.f32.xlu0 %v568_v22 }
 0x15d   : > { %v252_v23 = vpop.permute.xlu2 %251 }
 0x15e   : > { %v296_v24 = vadd.f32 %v1186_v12, %v252_v23  ;;  %v315_v25 = vadd.f32 %v1188_v13, %v252_v23 }
 0x160   : > { %v1201_v26 = vpop.eup %868  ;;  %v328_v27 = vand.u32 2147483647, %v296_v24  ;;  %v329_v28 = vand.u32 2147483647, %v315_v25  ;;  %v324_v48 = vmax.f32 %v296_v24, 0.0  ;;  %v325_v52 = vmax.f32 %v315_v25, 0.0 }
 0x161   : > { %v571_v29 = vsel %vm279_vm0, %v1201_v26, 0.0 }
 0x162   : > { %v332_v30 = vsub.f32 0.0, %v328_v27  ;;  %v333_v31 = vsub.f32 0.0, %v329_v28  ;;  %572 = vadd.xlane.f32.xlu2 %v571_v29  ;;  %v418_v29 = vpop.xlane.xlu1 %417 }
 0x164   : > { %v336_v32 = vmul.f32 1.442695, %v332_v30  ;;  %v338_v33 = vmul.f32 1.442695, %v333_v31  ;;  %v419_v30 = vadd.f32 1e-06, %v418_v29 }
 0x166   : > { %870 = vpow2.f32 %v336_v32 }
 0x167   : > { %872 = vpow2.f32 %v338_v33  ;;  %v397_v43 = vpop.f32.mrf.mxu2 }
 0x168   : > { %v411_v44 = vpop.f32.mrf.mxu3 }
 0x169   : > { %v412_v55 = vadd.f32 %v411_v44, %v397_v43 }
 0x16c   : > { %v871_v34 = vpop.eup %870 }
 0x16d   : > { %v873_v35 = vpop.eup %872  ;;  %v344_v36 = vadd.f32 1.0, %v871_v34  ;;  %v347_v12 = vmul.f32 -0.5, %v871_v34  ;;  %v350_v39 = vand.u32 2147483647, %v871_v34 }
 0x16e   : > { %v353_v37 = vadd.f32 1.0, %v873_v35  ;;  %v356_v13 = vmul.f32 -0.5, %v873_v35  ;;  %v359_v41 = vand.u32 2147483647, %v873_v35 }
 0x16f   : > { %874 = vlog2.f32 %v344_v36  ;;  %v348_v38 = vadd.f32 1.0, %v347_v12  ;;  %vm351_vm3 = vcmp.lt.f32.partialorder %v350_v39, 0.0004427343  ;;  %v399_v57 = vpop.f32.mrf.mxu2 }
 0x170   : > { %876 = vlog2.f32 %v353_v37  ;;  %v357_v40 = vadd.f32 1.0, %v356_v13  ;;  %vm360_vm4 = vcmp.lt.f32.partialorder %v359_v41, 0.0004427343  ;;  %v413_v58 = vpop.f32.mrf.mxu3 }
 0x171   : > { %v349_v47 = vmul.f32 %v871_v34, %v348_v38  ;;  %v414_v59 = vadd.f32 %v413_v58, %v399_v57 }
 0x172   : > { %v358_v50 = vmul.f32 %v873_v35, %v357_v40 }
 0x175   : > { %v875_v42 = vpop.eup %874 }
 0x176   : > { %v877_v45 = vpop.eup %876  ;;  %v346_v46 = vmul.f32 0.6931472, %v875_v42 }
 0x177   : > { %v355_v49 = vmul.f32 0.6931472, %v877_v45 }
 0x178   : > { %v352_v51 = vsel %vm351_vm3, %v349_v47, %v346_v46 }
 0x179   : > { %v380_v53 = vadd.f32 %v352_v51, %v324_v48  ;;  %v361_v54 = vsel %vm360_vm4, %v358_v50, %v355_v49 }
 0x17a   : > { %v381_v56 = vadd.f32 %v361_v54, %v325_v52 }
 0x17b   : > { %484 = vmatpush.msrb.mxu2 %v380_v53  ;;  %v420_v31 = vmul.f32 %v419_v30, %v380_v53 }
 0x17c   : > { %507 = vmatpush.msrb.mxu3 %v381_v56  ;;  %778 = vmatmul.msk.f32.vlgmr.msrb.gmra.mxu2 %vm462_vm5, %v412_v55  ;;  %v421_v32 = vmul.f32 %v419_v30, %v381_v56 }
 0x17d   : > { %780 = vmatmul.msk.f32.vlgmr.msrb.gmra.mxu3 %vm462_vm5, %v412_v55  ;;  %615 = vmatpush.bf16.msra.mxu2 %v1153_v3  ;;  %v422_v33 = vrot.slane %v420_v31, 4 }
 0x17e   : > { %629 = vmatpush.bf16.msra.mxu3 %v1159_v6  ;;  %v428_v34 = vrot.slane %v421_v32, 4 }
 0x17f   : > { %v423_v35 = vadd.f32 %v422_v33, %v420_v31 }
 0x180   : > { %v429_v36 = vadd.f32 %v428_v34, %v421_v32 }
 0x181   : > { %v424_v12 = vrot.slane %v423_v35, 2 }
 0x182   : > { %v430_v37 = vrot.slane %v429_v36, 2 }
 0x183   : > { %v425_v13 = vadd.f32 %v424_v12, %v423_v35 }
 0x184   : > { %779 = vmatmul.msk.f32.gmra.mxu2 %vm462_vm5, %v414_v59  ;;  %v431_v38 = vadd.f32 %v430_v37, %v429_v36 }
 0x185   : > { %781 = vmatmul.msk.f32.gmra.mxu3 %vm462_vm5, %v414_v59 }
 0x186   : > { %v432_v39 = vrot.slane %v431_v38, 1 }
 0x188   : > { %v433_v40 = vadd.f32 %v432_v39, %v431_v38 }
 0x18a   : > { %v459_v54 = vand.u32 2147483648, %v433_v40  ;;  %vm453_vm2 = vweird.f32 %v433_v40  ;;  %v457_v56 = vand.u32 2147483647, %v433_v40 }
 0x18c   : > { %vm458_vm5 = vcmp.eq.f32.partialorder %v457_v56, 8.507059e+37 }
 0x1cd   : > { %v570_v60 = vpop.xlane.xlu0 %569 }
 0x1ce   : > { %878 = vrcp.f32 %v570_v60  ;;  %v585_v3 = vand.u32 2147483648, %v570_v60  ;;  %vm579_vm7 = vweird.f32 %v570_v60  ;;  %v583_v6 = vand.u32 2147483647, %v570_v60 }
 0x1d0   : > { %v586_v18 = vor.u32 1.1754944e-38, %v585_v3  ;;  %vm584_vm10 = vcmp.eq.f32.partialorder %v583_v6, 8.507059e+37  ;;  %v636_v6 = vstv %s765_s11 }
 0x1d4   : > { %v879_v61 = vpop.eup %878 }
 0x1d5   : > { %v575_v62 = vmul.f32 %v879_v61, %v570_v60  ;;  %v573_v63 = vpop.xlane.xlu2 %572  ;;  %vm580_vm6 = vweird.f32 %v879_v61  ;;  %v460_v60 = vor.u32 1.1754944e-38, %v459_v54 }
 0x1d6   : > { %880 = vrcp.f32 %v573_v63  ;;  %vm581_vm8 = vmor %vm579_vm7, %vm580_vm6  ;;  %v599_v14 = vand.u32 2147483648, %v573_v63  ;;  %v597_v17 = vand.u32 2147483647, %v573_v63  ;;  %vm593_vm11 = vweird.f32 %v573_v63 }
 0x1d7   : > { %v576_v5 = vsub.f32 1.0, %v575_v62 }
 0x1d8   : > { %v600_v22 = vor.u32 1.1754944e-38, %v599_v14  ;;  %vm598_vm13 = vcmp.eq.f32.partialorder %v597_v17, 8.507059e+37 }
 0x1d9   : > { %v577_v7 = vmul.f32 %v879_v61, %v576_v5 }
 0x1db   : > { %v578_v9 = vadd.f32 %v879_v61, %v577_v7 }
 0x1dc   : > { %v881_v8 = vpop.eup %880 }
 0x1dd   : > { %v589_v10 = vmul.f32 %v881_v8, %v573_v63  ;;  %v582_v15 = vsel %vm581_vm8, %v879_v61, %v578_v9  ;;  %vm594_vm9 = vweird.f32 %v881_v8  ;;  %v519_v9 = vstv %s233_s7 }
 0x1de   : > { %v587_v21 = vsel %vm584_vm10, %v586_v18, %v582_v15  ;;  %vm595_vm12 = vmor %vm593_vm11, %vm594_vm9 }
 0x1df   : > { %v590_v11 = vsub.f32 1.0, %v589_v10  ;;  %v602_v25 = vmul.f32 %v1195_v20, %v587_v21  ;;  %v426_v20 = vrot.slane %v425_v13, 1 }
 0x1e1   : > { %v591_v16 = vmul.f32 %v881_v8, %v590_v11 }
 0x1e3   : > { %v592_v19 = vadd.f32 %v881_v8, %v591_v16 }
 0x1e5   : > { %v596_v23 = vsel %vm595_vm12, %v881_v8, %v592_v19 }
 0x1e6   : > { %v601_v24 = vsel %vm598_vm13, %v600_v22, %v596_v23 }
 0x1e7   : > { %v603_v27 = vmul.f32 %v1201_v26, %v601_v24  ;;  %v427_v26 = vadd.f32 %v426_v20, %v425_v13 }
 0x1e9   : > { %v604_v28 = vpack.c.bf16 %v603_v27, %v602_v25  ;;  %882 = vrcp.f32 %v427_v26  ;;  %v445_v53 = vand.u32 2147483648, %v427_v26  ;;  %v443_v55 = vand.u32 2147483647, %v427_v26 }
 0x1ea   : > { %884 = vrcp.f32 %v433_v40 }
 0x1eb   : > { %782 = vmatmul.msk.bf16.vlgmr.msra.gmra.mxu2 %vm279_vm0, %v604_v28  ;;  %783 = vmatmul.msk.bf16.vlgmr.msra.gmra.mxu3 %vm279_vm0, %v604_v28  ;;  %vm439_vm0 = vweird.f32 %v427_v26  ;;  %v446_v59 = vor.u32 1.1754944e-38, %v445_v53  ;;  %vm444_vm4 = vcmp.eq.f32.partialorder %v443_v55, 8.507059e+37 }
 0x1ef   : > { %v883_v41 = vpop.eup %882 }
 0x1f0   : > { %v885_v42 = vpop.eup %884  ;;  %v435_v43 = vmul.f32 %v883_v41, %v427_v26  ;;  %vm440_vm14 = vweird.f32 %v883_v41 }
 0x1f1   : > { %v449_v44 = vmul.f32 %v885_v42, %v433_v40  ;;  %vm454_vm15 = vweird.f32 %v885_v42  ;;  %vm441_vm1 = vmor %vm439_vm0, %vm440_vm14 }
 0x1f2   : > { %v436_v45 = vsub.f32 1.0, %v435_v43  ;;  %vm455_vm3 = vmor %vm453_vm2, %vm454_vm15 }
 0x1f3   : > { %v450_v46 = vsub.f32 1.0, %v449_v44 }
 0x1f4   : > { %v437_v47 = vmul.f32 %v883_v41, %v436_v45 }
 0x1f5   : > { %v451_v49 = vmul.f32 %v885_v42, %v450_v46 }
 0x1f6   : > { %v438_v51 = vadd.f32 %v883_v41, %v437_v47 }
 0x1f7   : > { %v452_v52 = vadd.f32 %v885_v42, %v451_v49 }
 0x1f8   : > { %v442_v57 = vsel %vm441_vm1, %v883_v41, %v438_v51 }
 0x1f9   : > { %v456_v58 = vsel %vm455_vm3, %v885_v42, %v452_v52  ;;  %v447_v63 = vsel %vm444_vm4, %v446_v59, %v442_v57 }
 0x1fa   : > { %v461_v5 = vsel %vm458_vm5, %v460_v60, %v456_v58 }
 0x1ff   : > { %v486_v48 = vpop.f32.mrf.mxu2 }
 0x200   : > { %v509_v50 = vpop.f32.mrf.mxu3  ;;  %v515_v7 = vmul.f32 %v486_v48, %v447_v63 }
 0x201   : > { %v516_v8 = vmul.f32 %v509_v50, %v461_v5 }
 0x202   : > { %v520_v10 = vmul.f32 %v519_v9, %v515_v7 }
 0x203   : > { %v521_v3 = vmul.f32 %v519_v9, %v516_v8 }
 0x204   : > { %v524_v17 = vadd.f32 %v520_v10, %v1145_v0 }
 0x205   : > { %v525_v18 = vadd.f32 %v521_v3, %v1149_v2 }
 0x207   : > { %v489_v61 = vpop.f32.mrf.mxu2 }
 0x208   : > { %v512_v62 = vpop.f32.mrf.mxu3  ;;  %v517_v19 = vmul.f32 %v489_v61, %v447_v63 }
 0x209   : > { %v518_v21 = vmul.f32 %v512_v62, %v461_v5 }
 0x20a   : > { %v522_v27 = vmul.f32 %v519_v9, %v517_v19 }
 0x20b   : > { %v523_v28 = vmul.f32 %v519_v9, %v518_v21 }
 0x20d   : > { %v527_v32 = vadd.f32 %v523_v28, %v1155_v4 }
 0x26e   : > { %v617_v11 = vpop.f32.mrf.mxu2  ;;  %v631_v14 = vpop.f32.mrf.mxu3 }
 0x26f   : > { %v637_v15 = vmul.f32 %v636_v6, %v617_v11  ;;  %v638_v16 = vmul.f32 %v636_v6, %v631_v14 }
 0x271   : > { %v641_v22 = vadd.f32 %v637_v15, %v1145_v0  ;;  %v642_v23 = vadd.f32 %v638_v16, %v1149_v2  ;;  %v526_v2 = vadd.f32 %v522_v27, %v1147_v1 }
 0x273   : > { %v645_v24 = vadd.f32 %v641_v22, %v524_v17  ;;  %v646_v25 = vadd.f32 %v642_v23, %v525_v18 }
 0x275   : > { %649 = vst [vmem:[%s231_s22] sm:$0xff] %v645_v24 }
 0x276   : > { %650 = vst [vmem:[%s231_s22 + $0x8] sm:$0xff] %v646_v25  ;;  %v619_v29 = vpop.f32.mrf.mxu2  ;;  %v633_v30 = vpop.f32.mrf.mxu3 }
 0x277   : > { %v639_v0 = vmul.f32 %v636_v6, %v619_v29  ;;  %v640_v31 = vmul.f32 %v636_v6, %v633_v30 }
 0x279   : > { %v643_v33 = vadd.f32 %v639_v0, %v1147_v1  ;;  %v644_v34 = vadd.f32 %v640_v31, %v1155_v4 }
 0x27b   : > { %v647_v35 = vadd.f32 %v643_v33, %v526_v2  ;;  %v648_v36 = vadd.f32 %v644_v34, %v527_v32 }
 0x27d   : > { %651 = vst [vmem:[%s231_s22 + $0x10] sm:$0xff] %v647_v35 }
 0x27e   : > { %652 = vst [vmem:[%s231_s22 + $0x18] sm:$0xff] %v648_v36 }
 0x27f   : > { %958 = shalt.err (!%p955_p8)
}
 0x280   : > { %s1007_s14 = smov 256   ;;  %s1008_s12 = smov 16  }
 0x281   : > { %799 = dma.vmem_to_hbm [thread:$0]  (%p1086_p11), %s667_s13, 512, %s669_s23, %s654_s19, %s1007_s14, %s1007_s14, %s1008_s12  }
 0x282 PF: > { %s683_s7 = sand.u32 1, %s989_s15   ;;  %p1267_p9 = scmp.ge.s32.totalorder %s1001_s18, 2 }
 0x283   : > { %s684_s11 = scalar_lea.sflag [#allocation4], %s683_s7 }
 0x284   : > { %p810_p10 = pnand %p1267_p9, %p1090_p12 }
 0x286   : > { %p811_p1 = pneg %p810_p10 }
 0x288   : > { %984 = dma.done.wait (%p811_p1), %s684_s11, 512  }
 0x289   : > { %986 = vsyncadd (%p811_p1), %s684_s11, 4294966784  ;;  %p18_p2 = scmp.ge.s32.totalorder %s1059_s21, 4   ;;  %s1268_s15 = smov %s993_s16 }
 0x28a   : > { %s1269_s16 = smov %s997_s17  ;;  %s1270_s17 = smov %s1071_s24 }
 0x28b   : > { %s1271_s18 = smov %s1059_s21  ;;  %20 = sbr.rel (!%p18_p2) target bundleno = 8 (0x8), region = 86 }
 0x290   :  { %690 = vsyncpa [#allocation3], 1 }
 0x291   :  { %692 = vsyncpa [#allocation3 + $0x1], 1 }
 0x292   :  { %693 = vsyncpa [#allocation4], 1 }
 0x293   :  { %695 = vsyncpa [#allocation4 + $0x1], 1 }
 0x294   :  { %696 = vsyncpa [#allocation5], 1 }
 0x295   :  { %698 = vsyncpa [#allocation5 + $0x1], 1 }

</bundles_post_ra>
